<compile_context>
chip_gen: v5e
topology: v5e:2x2
jax: 0.10.0
libtpu: 0.0.40
codegen_flags: <defaults>
</compile_context>

<pallas_src>
import functools

import jax
import jax.numpy as jnp
from jax.experimental import pallas as pl
from jax.experimental.pallas import tpu as pltpu


# -----------------------------------------------------------------------------
# Fused Pallas kernel for one SetOpBlock_v4 forward pass (eval mode).
# -----------------------------------------------------------------------------
def _make_setop_block_kernel(layers_num: int, negative_slope: float = 0.2):
    def kernel(a_ref, b_ref, w0_ref, bh_ref, wh_ref, wf_ref, bf_ref, out_ref):
        # a_ref/b_ref: (TM, D) bf16 tiles of the current grid step.
        # Lane-aligned concat (both operands are exactly 128 lanes wide) -> one
        # K = 2D matmul against the full first-layer weight.
        ab = jnp.concatenate([a_ref[...], b_ref[...]], axis=1)        # (TM, 2D) bf16

        x = jnp.dot(ab, w0_ref[...], preferred_element_type=jnp.float32)
        x = x + bh_ref[pl.ds(0, 1), :]                                # f32 bias (BN folded)
        x = jnp.maximum(x, negative_slope * x)                        # LeakyReLU(0.2)

        for i in range(layers_num):
            x = jnp.dot(x.astype(jnp.bfloat16), wh_ref[i],            # (L, L) bf16, BN folded
                        preferred_element_type=jnp.float32)
            x = x + bh_ref[pl.ds(i + 1, 1), :]
            x = jnp.maximum(x, negative_slope * x)                    # LeakyReLU(0.2)
            # Dropout(p) -> identity in eval mode.

        y = jnp.dot(x.astype(jnp.bfloat16), wf_ref[...],
                    preferred_element_type=jnp.float32) + bf_ref[...]
        out_ref[...] = y.astype(out_ref.dtype)

    return kernel


def setop_block_forward(a, b, packed_params, *, input_dim: int, layers_num: int,
                        tile_m: int = 128):
    """Fused pallas_call for the whole SetOpBlock_v4 forward (eval mode)."""
    w0, bh, wh, wf, bf = packed_params
    latent = w0.shape[1]
    batch = a.shape[0]

    # Pad the batch to a multiple of the row tile (f32/bf16 sublane friendly).
    padded = int(pl.cdiv(batch, tile_m)) * tile_m
    if padded != batch:
        pad = padded - batch
        a = jnp.pad(a, ((0, pad), (0, 0)))
        b = jnp.pad(b, ((0, pad), (0, 0)))

    # Stream activations as bf16 (halves input DMA); accumulate in f32 inside.
    a = a.astype(jnp.bfloat16)
    b = b.astype(jnp.bfloat16)

    grid = (padded // tile_m,)
    flops = 2 * padded * (2 * input_dim * latent
                          + layers_num * latent * latent
                          + latent * input_dim)
    bytes_accessed = ((a.size + b.size) * 2                      # bf16 activations in
                      + (w0.size + wh.size + wf.size) * 2        # bf16 weights
                      + (bh.size + bf.size) * 4                  # f32 biases
                      + padded * input_dim * 4)                  # f32 output

    out = pl.pallas_call(
        _make_setop_block_kernel(layers_num),
        out_shape=jax.ShapeDtypeStruct((padded, input_dim), jnp.float32),
        grid=grid,
        in_specs=[
            pl.BlockSpec((tile_m, input_dim), lambda i: (i, 0)),              # a tile
            pl.BlockSpec((tile_m, input_dim), lambda i: (i, 0)),              # b tile
            pl.BlockSpec((2 * input_dim, latent), lambda i: (0, 0)),          # w0 (resident)
            pl.BlockSpec((layers_num + 1, latent), lambda i: (0, 0)),         # biases (resident)
            pl.BlockSpec((layers_num, latent, latent), lambda i: (0, 0, 0)),  # hidden W (resident)
            pl.BlockSpec((latent, input_dim), lambda i: (0, 0)),              # wf (resident)
            pl.BlockSpec((1, input_dim), lambda i: (0, 0)),                   # bf (resident)
        ],
        out_specs=pl.BlockSpec((tile_m, input_dim), lambda i: (i, 0)),
        compiler_params=pltpu.CompilerParams(
            dimension_semantics=("parallel",),          # shard batch tiles across TCs (v7x)
            vmem_limit_bytes=32 * 1024 * 1024),
        cost_estimate=pl.CostEstimate(flops=flops, transcendentals=0,
                                      bytes_accessed=bytes_accessed),
    )(a, b, w0, bh, wh, wf, bf)

    return out[:batch]


# -----------------------------------------------------------------------------
# Parameter construction (deterministic, in-script) + eval-mode BN folding (glue).
# -----------------------------------------------------------------------------
def init_setop_block_params(key, input_dim: int, latent_dim: int, layers_num: int,
                            eps: float = 1e-5):
    assert layers_num >= 1

    def linear(k, fan_in, fan_out):
        k_w, k_b = jax.random.split(k)
        bound = 1.0 / jnp.sqrt(fan_in)
        w = jax.random.uniform(k_w, (fan_in, fan_out), jnp.float32, -bound, bound)
        b = jax.random.uniform(k_b, (fan_out,), jnp.float32, -bound, bound)
        return w, b

    def batchnorm(k, dim):
        k_g, k_be, k_m, k_v = jax.random.split(k, 4)
        gamma = 1.0 + 0.1 * jax.random.normal(k_g, (dim,), jnp.float32)
        beta = 0.1 * jax.random.normal(k_be, (dim,), jnp.float32)
        mean = 0.1 * jax.random.normal(k_m, (dim,), jnp.float32)
        var = jnp.abs(jax.random.normal(k_v, (dim,), jnp.float32)) + 0.5
        return gamma, beta, mean, var

    keys = jax.random.split(key, 2 * (layers_num + 1) + 1)
    raw = {"bn": [], "wh": [], "bh": []}

    # Linear(2D, L) + BN(L)  -> folded
    w0, b0 = linear(keys[0], 2 * input_dim, latent_dim)
    bn0 = batchnorm(keys[1], latent_dim)
    raw["w0"], raw["b0"] = w0, b0
    raw["bn"].append(bn0)
    g, be, m, v = bn0
    scale = g / jnp.sqrt(v + eps)
    shift = be - m * scale
    w0_f = w0 * scale[None, :]
    biases = [b0 * scale + shift]

    # layers_num x [Linear(L, L) + BN(L)] -> folded
    wh_f = []
    for i in range(layers_num):
        w, bb = linear(keys[2 + 2 * i], latent_dim, latent_dim)
        bn = batchnorm(keys[3 + 2 * i], latent_dim)
        raw["wh"].append(w)
        raw["bh"].append(bb)
        raw["bn"].append(bn)
        g, be, m, v = bn
        scale = g / jnp.sqrt(v + eps)
        shift = be - m * scale
        wh_f.append(w * scale[None, :])
        biases.append(bb * scale + shift)

    # Final Linear(L, D) (no BN)
    wf, bf = linear(keys[-1], latent_dim, input_dim)
    raw["wf"], raw["bf"] = wf, bf

    packed = (
        w0_f.astype(jnp.bfloat16),                       # (2D, L)  bf16 MXU operand
        jnp.stack(biases, axis=0),                       # (layers_num + 1, L) f32
        jnp.stack(wh_f, axis=0).astype(jnp.bfloat16),    # (layers_num, L, L) bf16
        wf.astype(jnp.bfloat16),                         # (L, D)   bf16
        bf.reshape(1, input_dim),                        # (1, D)   f32
    )
    return packed, raw


def reference_forward(a, b, raw, layers_num: int, negative_slope: float = 0.2,
                      eps: float = 1e-5):
    """Pure-JAX eval-mode reference (unfolded BN, f32 HIGHEST) for correctness."""
    hp = jax.lax.Precision.HIGHEST

    def bn(x, params):
        g, be, m, v = params
        return (x - m) / jnp.sqrt(v + eps) * g + be

    def lrelu(x):
        return jnp.where(x > 0, x, negative_slope * x)

    x = jnp.concatenate([a, b], axis=1)
    x = lrelu(bn(jnp.dot(x, raw["w0"], precision=hp) + raw["b0"], raw["bn"][0]))
    for i in range(layers_num):
        x = jnp.dot(x, raw["wh"][i], precision=hp) + raw["bh"][i]
        x = lrelu(bn(x, raw["bn"][i + 1]))
    return jnp.dot(x, raw["wf"], precision=hp) + raw["bf"]


# -----------------------------------------------------------------------------
if __name__ == "__main__":
    key = jax.random.PRNGKey(0)
    k_a, k_b, k_p = jax.random.split(key, 3)

    batch = 256           # 2 grid steps of TM=128 rows (fills MXU rows, exercises the grid)
    input_dim = 128       # lane-dense inputs/output (last dim multiple of 128)
    latent_dim = 128
    layers_num = 3        # module default
    tile_m = 128

    a = jax.random.normal(k_a, (batch, input_dim), jnp.float32)
    b = jax.random.normal(k_b, (batch, input_dim), jnp.float32)
    packed, raw = init_setop_block_params(k_p, input_dim, latent_dim, layers_num)

    fwd = jax.jit(functools.partial(setop_block_forward,
                                    input_dim=input_dim, layers_num=layers_num,
                                    tile_m=tile_m))
    out = fwd(a, b, packed)
    jax.block_until_ready(out)

    assert out.shape == (batch, input_dim), out.shape

    ref = reference_forward(a, b, raw, layers_num)
    max_err = float(jnp.max(jnp.abs(out - ref)))
    assert max_err < 5e-2, f"max abs error vs reference too large: {max_err}"

    print("KERNEL_OK")
</pallas_src>

<mosaic_0001>
module attributes {stable_mosaic.version = 11 : i64} {
  func.func @kernel(%arg0: i32, %arg1: memref<128x128xbf16, #tpu.memory_space<vmem>>, %arg2: memref<128x128xbf16, #tpu.memory_space<vmem>>, %arg3: memref<256x128xbf16, #tpu.memory_space<vmem>>, %arg4: memref<4x128xf32, #tpu.memory_space<vmem>>, %arg5: memref<3x128x128xbf16, #tpu.memory_space<vmem>>, %arg6: memref<128x128xbf16, #tpu.memory_space<vmem>>, %arg7: memref<1x128xf32, #tpu.memory_space<vmem>>, %arg8: memref<128x128xf32, #tpu.memory_space<vmem>>) attributes {dimension_semantics = [#tpu.dimension_semantics<parallel>], iteration_bounds = array<i64: 2>, scalar_prefetch = 0 : i64, scratch_operands = 0 : i64, tpu.core_type = #tpu.core_type<tc>, window_params = [{transform_indices = @transform_0, window_bounds = array<i64: 128, 128>}, {transform_indices = @transform_1, window_bounds = array<i64: 128, 128>}, {pipeline_mode = #tpu.pipeline_mode<synchronous>, transform_indices = @transform_2, window_bounds = array<i64: 256, 128>}, {pipeline_mode = #tpu.pipeline_mode<synchronous>, transform_indices = @transform_3, window_bounds = array<i64: 4, 128>}, {pipeline_mode = #tpu.pipeline_mode<synchronous>, transform_indices = @transform_4, window_bounds = array<i64: 3, 128, 128>}, {pipeline_mode = #tpu.pipeline_mode<synchronous>, transform_indices = @transform_5, window_bounds = array<i64: 128, 128>}, {pipeline_mode = #tpu.pipeline_mode<synchronous>, transform_indices = @transform_6, window_bounds = array<i64: 1, 128>}, {transform_indices = @transform_7, window_bounds = array<i64: 128, 128>}]} {
    %c0 = arith.constant 0 : index
    %c0_0 = arith.constant 0 : index
    %0 = vector.load %arg1[%c0, %c0_0] : memref<128x128xbf16, #tpu.memory_space<vmem>>, vector<128x128xbf16>
    %c0_1 = arith.constant 0 : index
    %c0_2 = arith.constant 0 : index
    %1 = vector.load %arg2[%c0_1, %c0_2] : memref<128x128xbf16, #tpu.memory_space<vmem>>, vector<128x128xbf16>
    %2 = tpu.concatenate %0, %1 in 1 : vector<128x128xbf16>, vector<128x128xbf16> -> vector<128x256xbf16>
    %c0_3 = arith.constant 0 : index
    %c0_4 = arith.constant 0 : index
    %3 = vector.load %arg3[%c0_3, %c0_4] : memref<256x128xbf16, #tpu.memory_space<vmem>>, vector<256x128xbf16>
    %cst = arith.constant dense<0.000000e+00> : vector<128x128xf32>
    %4 = tpu.matmul %2, %3, %cst {dimension_numbers = #tpu.dot_dimension_numbers<[1], [0], [0], [1], [0, 0, 1, 1], [], []>} : vector<128x256xbf16>, vector<256x128xbf16>, vector<128x128xf32> -> vector<128x128xf32>
    %c0_5 = arith.constant 0 : index
    %c0_6 = arith.constant 0 : index
    %5 = vector.load %arg4[%c0_5, %c0_6] : memref<4x128xf32, #tpu.memory_space<vmem>>, vector<1x128xf32>
    %6 = vector.broadcast %5 : vector<1x128xf32> to vector<128x128xf32>
    %7 = arith.addf %4, %6 : vector<128x128xf32>
    %cst_7 = arith.constant 2.000000e-01 : f32
    %8 = vector.broadcast %cst_7 : f32 to vector<128x128xf32>
    %9 = arith.mulf %8, %7 : vector<128x128xf32>
    %10 = arith.maximumf %7, %9 : vector<128x128xf32>
    %11 = arith.truncf %10 : vector<128x128xf32> to vector<128x128xbf16>
    %c0_8 = arith.constant 0 : index
    %c0_9 = arith.constant 0 : index
    %c0_10 = arith.constant 0 : index
    %12 = vector.load %arg5[%c0_8, %c0_9, %c0_10] : memref<3x128x128xbf16, #tpu.memory_space<vmem>>, vector<1x128x128xbf16>
    %13 = vector.shape_cast %12 : vector<1x128x128xbf16> to vector<128x128xbf16>
    %cst_11 = arith.constant dense<0.000000e+00> : vector<128x128xf32>
    %14 = tpu.matmul %11, %13, %cst_11 {dimension_numbers = #tpu.dot_dimension_numbers<[1], [0], [0], [1], [0, 0, 1, 1], [], []>} : vector<128x128xbf16>, vector<128x128xbf16>, vector<128x128xf32> -> vector<128x128xf32>
    %c1 = arith.constant 1 : index
    %c0_12 = arith.constant 0 : index
    %15 = vector.load %arg4[%c1, %c0_12] : memref<4x128xf32, #tpu.memory_space<vmem>>, vector<1x128xf32>
    %16 = vector.broadcast %15 : vector<1x128xf32> to vector<128x128xf32>
    %17 = arith.addf %14, %16 : vector<128x128xf32>
    %cst_13 = arith.constant 2.000000e-01 : f32
    %18 = vector.broadcast %cst_13 : f32 to vector<128x128xf32>
    %19 = arith.mulf %18, %17 : vector<128x128xf32>
    %20 = arith.maximumf %17, %19 : vector<128x128xf32>
    %21 = arith.truncf %20 : vector<128x128xf32> to vector<128x128xbf16>
    %c1_14 = arith.constant 1 : index
    %c0_15 = arith.constant 0 : index
    %c0_16 = arith.constant 0 : index
    %22 = vector.load %arg5[%c1_14, %c0_15, %c0_16] : memref<3x128x128xbf16, #tpu.memory_space<vmem>>, vector<1x128x128xbf16>
    %23 = vector.shape_cast %22 : vector<1x128x128xbf16> to vector<128x128xbf16>
    %cst_17 = arith.constant dense<0.000000e+00> : vector<128x128xf32>
    %24 = tpu.matmul %21, %23, %cst_17 {dimension_numbers = #tpu.dot_dimension_numbers<[1], [0], [0], [1], [0, 0, 1, 1], [], []>} : vector<128x128xbf16>, vector<128x128xbf16>, vector<128x128xf32> -> vector<128x128xf32>
    %c2 = arith.constant 2 : index
    %c0_18 = arith.constant 0 : index
    %25 = vector.load %arg4[%c2, %c0_18] : memref<4x128xf32, #tpu.memory_space<vmem>>, vector<1x128xf32>
    %26 = vector.broadcast %25 : vector<1x128xf32> to vector<128x128xf32>
    %27 = arith.addf %24, %26 : vector<128x128xf32>
    %cst_19 = arith.constant 2.000000e-01 : f32
    %28 = vector.broadcast %cst_19 : f32 to vector<128x128xf32>
    %29 = arith.mulf %28, %27 : vector<128x128xf32>
    %30 = arith.maximumf %27, %29 : vector<128x128xf32>
    %31 = arith.truncf %30 : vector<128x128xf32> to vector<128x128xbf16>
    %c2_20 = arith.constant 2 : index
    %c0_21 = arith.constant 0 : index
    %c0_22 = arith.constant 0 : index
    %32 = vector.load %arg5[%c2_20, %c0_21, %c0_22] : memref<3x128x128xbf16, #tpu.memory_space<vmem>>, vector<1x128x128xbf16>
    %33 = vector.shape_cast %32 : vector<1x128x128xbf16> to vector<128x128xbf16>
    %cst_23 = arith.constant dense<0.000000e+00> : vector<128x128xf32>
    %34 = tpu.matmul %31, %33, %cst_23 {dimension_numbers = #tpu.dot_dimension_numbers<[1], [0], [0], [1], [0, 0, 1, 1], [], []>} : vector<128x128xbf16>, vector<128x128xbf16>, vector<128x128xf32> -> vector<128x128xf32>
    %c3 = arith.constant 3 : index
    %c0_24 = arith.constant 0 : index
    %35 = vector.load %arg4[%c3, %c0_24] : memref<4x128xf32, #tpu.memory_space<vmem>>, vector<1x128xf32>
    %36 = vector.broadcast %35 : vector<1x128xf32> to vector<128x128xf32>
    %37 = arith.addf %34, %36 : vector<128x128xf32>
    %cst_25 = arith.constant 2.000000e-01 : f32
    %38 = vector.broadcast %cst_25 : f32 to vector<128x128xf32>
    %39 = arith.mulf %38, %37 : vector<128x128xf32>
    %40 = arith.maximumf %37, %39 : vector<128x128xf32>
    %41 = arith.truncf %40 : vector<128x128xf32> to vector<128x128xbf16>
    %c0_26 = arith.constant 0 : index
    %c0_27 = arith.constant 0 : index
    %42 = vector.load %arg6[%c0_26, %c0_27] : memref<128x128xbf16, #tpu.memory_space<vmem>>, vector<128x128xbf16>
    %cst_28 = arith.constant dense<0.000000e+00> : vector<128x128xf32>
    %43 = tpu.matmul %41, %42, %cst_28 {dimension_numbers = #tpu.dot_dimension_numbers<[1], [0], [0], [1], [0, 0, 1, 1], [], []>} : vector<128x128xbf16>, vector<128x128xbf16>, vector<128x128xf32> -> vector<128x128xf32>
    %c0_29 = arith.constant 0 : index
    %c0_30 = arith.constant 0 : index
    %44 = vector.load %arg7[%c0_29, %c0_30] : memref<1x128xf32, #tpu.memory_space<vmem>>, vector<1x128xf32>
    %45 = vector.broadcast %44 : vector<1x128xf32> to vector<128x128xf32>
    %46 = arith.addf %43, %45 : vector<128x128xf32>
    %c0_31 = arith.constant 0 : index
    %c0_32 = arith.constant 0 : index
    %47 = vector.load %arg8[%c0_31, %c0_32] : memref<128x128xf32, #tpu.memory_space<vmem>>, vector<128x128xf32>
    tpu.vector_store %arg8[%c0_31, %c0_32], %46 {strides = array<i32>} : memref<128x128xf32, #tpu.memory_space<vmem>>, vector<128x128xf32>,
    return
  }
  func.func @transform_0(%arg0: i32) -> (i32, i32) {
    %c0_i32 = arith.constant 0 : i32
    %c0_i32_0 = arith.constant 0 : i32
    return %arg0, %c0_i32 : i32, i32
  }
  func.func @transform_1(%arg0: i32) -> (i32, i32) {
    %c0_i32 = arith.constant 0 : i32
    %c0_i32_0 = arith.constant 0 : i32
    return %arg0, %c0_i32 : i32, i32
  }
  func.func @transform_2(%arg0: i32) -> (i32, i32) {
    %c0_i32 = arith.constant 0 : i32
    %c0_i32_0 = arith.constant 0 : i32
    %c0_i32_1 = arith.constant 0 : i32
    return %c0_i32, %c0_i32_0 : i32, i32
  }
  func.func @transform_3(%arg0: i32) -> (i32, i32) {
    %c0_i32 = arith.constant 0 : i32
    %c0_i32_0 = arith.constant 0 : i32
    %c0_i32_1 = arith.constant 0 : i32
    return %c0_i32, %c0_i32_0 : i32, i32
  }
  func.func @transform_4(%arg0: i32) -> (i32, i32, i32) {
    %c0_i32 = arith.constant 0 : i32
    %c0_i32_0 = arith.constant 0 : i32
    %c0_i32_1 = arith.constant 0 : i32
    %c0_i32_2 = arith.constant 0 : i32
    return %c0_i32, %c0_i32_0, %c0_i32_1 : i32, i32, i32
  }
  func.func @transform_5(%arg0: i32) -> (i32, i32) {
    %c0_i32 = arith.constant 0 : i32
    %c0_i32_0 = arith.constant 0 : i32
    %c0_i32_1 = arith.constant 0 : i32
    return %c0_i32, %c0_i32_0 : i32, i32
  }
  func.func @transform_6(%arg0: i32) -> (i32, i32) {
    %c0_i32 = arith.constant 0 : i32
    %c0_i32_0 = arith.constant 0 : i32
    %c0_i32_1 = arith.constant 0 : i32
    return %c0_i32, %c0_i32_0 : i32, i32
  }
  func.func @transform_7(%arg0: i32) -> (i32, i32) {
    %c0_i32 = arith.constant 0 : i32
    %c0_i32_0 = arith.constant 0 : i32
    return %arg0, %c0_i32 : i32, i32
  }
}

</mosaic_0001>

<bundles_post_ra>
// kernel: setop_block_forward.1
= control target key start
LH: loop header
LB: loop body
LE: loop exit
PB: predicated region body
PF: predicated region fallthrough
CT: control target
= control target key end

     0   :  { %12 = vsyncpa [#allocation3], 0  ;;  %s2284_s0 = inlined_call_operand.vmem [shape: bf16[256,128], index: 0, kind: input, shape index: {}]   ;;  %s2285_s1 = inlined_call_operand.vmem [shape: bf16[256,128], index: 1, kind: input, shape index: {}]   ;;  %s2286_s2 = inlined_call_operand.vmem [shape: bf16[256,128], index: 2, kind: input, shape index: {}]   ;;  %s2287_s3 = inlined_call_operand.vmem [shape: f32[4,128], index: 3, kind: input, shape index: {}]   ;;  %s2288_s4 = inlined_call_operand.vmem [shape: bf16[3,128,128], index: 4, kind: input, shape index: {}]   ;;  %s2289_s5 = inlined_call_operand.vmem [shape: bf16[128,128], index: 5, kind: input, shape index: {}]   ;;  %s2290_s6 = inlined_call_operand.vmem [shape: f32[1,128], index: 6, kind: input, shape index: {}]   ;;  %s2291_s7 = inlined_call_operand.hbm [shape: f32[256,128], index: 7, kind: output, shape index: {}]  }
   0x1   :  { %14 = vsyncpa [#allocation3 + $0x1], 0  ;;  %s1923_s24 = smov 0   ;;  %s1925_s25 = smov 0  }
   0x2   :  { %s1927_s26 = smov 0   ;;  %s1929_s27 = smov 0  }
   0x3 LB: > { %s1944_s28 = sadd.s32 4294967295, %s1879_s27   ;;  %s1388_s29 = sadd.s32 4294967294, %s1879_s27   ;;  %s1879_s27 = sphi %s1929_s27, %s2297_s27   ;;  %s1875_s26 = sphi %s1927_s26, %s2296_s26   ;;  %s1871_s25 = sphi %s1925_s25, %s2295_s25   ;;  %s1867_s24 = sphi %s1923_s24, %s2294_s24  }
   0x4   : > { %s1948_s30 = sadd.s32 1, %s1879_s27   ;;  %s184_s8 = sadd.s32 1, %s1875_s26 }
   0x5   : > { %s181_s9 = ssub.s32 %s1879_s27, %s1948_s30  ;;  %p194_p0 = scmp.ne.s32.totalorder %s1875_s26, %s1871_s25 }
   0x6   : > { %p182_p1 = scmp.eq.s32.totalorder %s181_s9, 0  ;;  %p195_p2 = scmp.eq.s32.totalorder %s1944_s28, 1 }
   0x7   : > { %p200_p3 = scmp.ne.s32.totalorder %s1871_s25, %s1867_s24  ;;  %p201_p4 = scmp.eq.s32.totalorder %s1388_s29, 1 }
   0x8   : > { %s1959_s10 = scalar_select %p182_p1, %s1875_s26, %s184_s8  }
   0x9   : > { %p1961_p5 = por %p195_p2, %p194_p0  ;;  %p1965_p6 = por %p201_p4, %p200_p3 }
   0xa   : > { %p1391_p7 = scmp.ge.s32.totalorder %s1879_s27, 1  ;;  %p252_p8 = scmp.lt.s32.totalorder %s1879_s27, 3 }
   0xc   : > { %p253_p9 = pnand %p1391_p7, %p252_p8 }
   0xd   : > { %s1393_s15 = sshll.u32 (!%p253_p9), %s1944_s28, 4  ;;  %s286_s16 = sand.u32 (!%p253_p9), 1, %s1871_s25  }
   0xe   : > { %256 = sbr.rel (%p253_p9) target bundleno = 885 (0x375), region = 48  ;;  %p290_p10 = scmp.lt.s32.totalorder (!%p253_p9), %s1393_s15, 31 }
   0xf   : > { %s1392_s17 = sshll.u32 (!%p253_p9), %s286_s16, 7  ;;  %s1754_s19 = sshll.u32 (!%p253_p9), %s1944_s28, 7 }
  0x10   : > { %s2232_s18 = scalar_lea.vmem (!%p253_p9), [#allocation2], %s1392_s17  ;;  %s1310_s23 = scalar_lea.hbm (!%p253_p9), %s2291_s7, %s1754_s19 }
  0x11   : > { %s1311_s29 = sshll.u32 (!%p253_p9), %s2232_s18, 4  ;;  %s1313_s8 = sshll.u32 (!%p253_p9), %s1310_s23, 4  ;;  %s1312_s29 = int_to_ptr.vmem [resolvable:$true] %s1311_s29  ;;  %s1314_s8 = int_to_ptr.hbm [resolvable:$true] %s1313_s8 }
  0x12   : > { %s1299_s9 = scalar_lea.sflag (!%p253_p9), [#allocation3], %s286_s16  ;;  %s1831_s13 = sshra.s32 (!%p253_p9), %s1314_s8, 4  ;;  %s1832_s13 = int_to_ptr.hbm [resolvable:$true] %s1831_s13 }
  0x13   : > { %v1713_v0 = vld [vmem:[%s2286_s2 + $0x38] sm:$0xff]  ;;  %v1712_v2 = vld [vmem:[%s2286_s2 + $0x30] sm:$0xff]  ;;  %v1711_v4 = vld [vmem:[%s2286_s2 + $0x28] sm:$0xff]  ;;  %s2299_s15 = smov (!%p290_p10, %s1393_s15), 31  ;;  %s1833_s28 = scalar_lea.hbm %s1832_s13, 128 }
  0x14   : > { %v1721_v1 = vld [vmem:[%s2286_s2 + $0x78] sm:$0xff]  ;;  %560 = vmatpush.bf16.msra.mxu0 %v1713_v0  ;;  %v1720_v3 = vld [vmem:[%s2286_s2 + $0x70] sm:$0xff]  ;;  %1755 = vmatpush.bf16.msra.mxu2 %v1713_v0  ;;  %v1719_v5 = vld [vmem:[%s2286_s2 + $0x68] sm:$0xff]  ;;  %s1394_s14 = sshll.u32 %s2299_s15, 2  ;;  %p1834_p11 = scmp.ne.s32.totalorder %s1832_s13, %s1833_s28 }
  0x15   : > { %609 = vmatpush.bf16.msra.mxu1 %v1721_v1  ;;  %1763 = vmatpush.bf16.msra.mxu3 %v1721_v1  ;;  %v1710_v6 = vld [vmem:[%s2286_s2 + $0x20] sm:$0xff]  ;;  %v1709_v8 = vld [vmem:[%s2286_s2 + $0x18] sm:$0xff]  ;;  %v1708_v10 = vld [vmem:[%s2286_s2 + $0x10] sm:$0xff]  ;;  %s2023_s22 = scalar_lea.vmem %s2284_s0, %s1394_s14  ;;  %s2028_s15 = scalar_lea.vmem %s2285_s1, %s1394_s14 }
  0x16   : > { %v1718_v7 = vld [vmem:[%s2286_s2 + $0x60] sm:$0xff]  ;;  %v1717_v9 = vld [vmem:[%s2286_s2 + $0x58] sm:$0xff]  ;;  %v1716_v11 = vld [vmem:[%s2286_s2 + $0x50] sm:$0xff]  ;;  %p1835_p12 = pnand %p1834_p11, %p1961_p5  ;;  %p1838_p0 = scmp.lt.s32.totalorder %s1832_s13, %s2291_s7 }
  0x17   : > { %v1707_v12 = vld [vmem:[%s2286_s2 + $0x8] sm:$0xff]  ;;  %v1706_v14 = vld [vmem:[%s2286_s2] sm:$0xff]  ;;  %v1729_v22 = vld [vmem:[%s2288_s4 + $0x38] sm:$0xff] }
  0x18   : > { %561 = vmatpush.bf16.msra.mxu0 %v1712_v2  ;;  %1756 = vmatpush.bf16.msra.mxu2 %v1712_v2  ;;  %v1715_v13 = vld [vmem:[%s2286_s2 + $0x48] sm:$0xff]  ;;  %v1714_v15 = vld [vmem:[%s2286_s2 + $0x40] sm:$0xff]  ;;  %v1728_v23 = vld [vmem:[%s2288_s4 + $0x30] sm:$0xff]  ;;  %p1836_p13 = pneg %p1835_p12 }
  0x19   : > { %610 = vmatpush.bf16.msra.mxu1 %v1720_v3  ;;  %1764 = vmatpush.bf16.msra.mxu3 %v1720_v3  ;;  %v1690_v16 = vld [vmem:[%s2023_s22] sm:$0xff]  ;;  %v1691_v18 = vld [vmem:[%s2023_s22 + $0x8] sm:$0xff]  ;;  %v1692_v24 = vld [vmem:[%s2023_s22 + $0x10] sm:$0xff] }
  0x1a   : > { %v1698_v17 = vld [vmem:[%s2028_s15] sm:$0xff]  ;;  %v1699_v19 = vld [vmem:[%s2028_s15 + $0x8] sm:$0xff]  ;;  %v1700_v25 = vld [vmem:[%s2028_s15 + $0x10] sm:$0xff] }
  0x1b   : > { %v1694_v20 = vld [vmem:[%s2023_s22 + $0x20] sm:$0xff]  ;;  %v1695_v26 = vld [vmem:[%s2023_s22 + $0x28] sm:$0xff]  ;;  %v1725_v30 = vld [vmem:[%s2288_s4 + $0x18] sm:$0xff] }
  0x1c   : > { %562 = vmatpush.bf16.msra.mxu0 %v1711_v4  ;;  %1757 = vmatpush.bf16.msra.mxu2 %v1711_v4  ;;  %v1702_v21 = vld [vmem:[%s2028_s15 + $0x20] sm:$0xff]  ;;  %v1703_v27 = vld [vmem:[%s2028_s15 + $0x28] sm:$0xff]  ;;  %v1724_v31 = vld [vmem:[%s2288_s4 + $0x10] sm:$0xff] }
  0x1d   : > { %611 = vmatpush.bf16.msra.mxu1 %v1719_v5  ;;  %1765 = vmatpush.bf16.msra.mxu3 %v1719_v5  ;;  %v1727_v28 = vld [vmem:[%s2288_s4 + $0x28] sm:$0xff]  ;;  %v1726_v29 = vld [vmem:[%s2288_s4 + $0x20] sm:$0xff]  ;;  %v1693_v32 = vld [vmem:[%s2023_s22 + $0x18] sm:$0xff] }
  0x1e   : > { %v1701_v33 = vld [vmem:[%s2028_s15 + $0x18] sm:$0xff]  ;;  %v1696_v34 = vld [vmem:[%s2023_s22 + $0x30] sm:$0xff]  ;;  %v1723_v38 = vld [vmem:[%s2288_s4 + $0x8] sm:$0xff] }
  0x1f   : > { %v1704_v35 = vld [vmem:[%s2028_s15 + $0x30] sm:$0xff]  ;;  %v1697_v36 = vld [vmem:[%s2023_s22 + $0x38] sm:$0xff]  ;;  %v1722_v39 = vld [vmem:[%s2288_s4] sm:$0xff]  ;;  %s1837_s22 = scalar_lea.hbm %s2291_s7, 256 }
  0x20   : > { %563 = vmatpush.bf16.msra.mxu0 %v1710_v6  ;;  %1758 = vmatpush.bf16.msra.mxu2 %v1710_v6  ;;  %v1705_v37 = vld [vmem:[%s2028_s15 + $0x38] sm:$0xff]  ;;  %v2073_v40 = vld [vmem:[%s2287_s3] ss:$0 sm:$0xff]  ;;  %p1839_p1 = scmp.lt.s32.totalorder %s1837_s22, %s1833_s28 }
  0x21   : > { %612 = vmatpush.bf16.msra.mxu1 %v1718_v7  ;;  %1766 = vmatpush.bf16.msra.mxu3 %v1718_v7 }
  0x22   : > { %p1840_p2 = por %p1839_p1, %p1838_p0 }
  0x24   : > { %564 = vmatpush.bf16.msra.mxu0 %v1709_v8  ;;  %1759 = vmatpush.bf16.msra.mxu2 %v1709_v8  ;;  %p1841_p3 = pnand %p1840_p2, %p1836_p13 }
  0x25   : > { %613 = vmatpush.bf16.msra.mxu1 %v1717_v9  ;;  %1767 = vmatpush.bf16.msra.mxu3 %v1717_v9 }
  0x28   : > { %565 = vmatpush.bf16.msra.mxu0 %v1708_v10  ;;  %1760 = vmatpush.bf16.msra.mxu2 %v1708_v10 }
  0x29   : > { %614 = vmatpush.bf16.msra.mxu1 %v1716_v11  ;;  %1768 = vmatpush.bf16.msra.mxu3 %v1716_v11 }
  0x2c   : > { %566 = vmatpush.bf16.msra.mxu0 %v1707_v12  ;;  %1761 = vmatpush.bf16.msra.mxu2 %v1707_v12 }
  0x2d   : > { %615 = vmatpush.bf16.msra.mxu1 %v1715_v13  ;;  %1769 = vmatpush.bf16.msra.mxu3 %v1715_v13 }
  0x30   : > { %567 = vmatpush.bf16.msra.mxu0 %v1706_v14  ;;  %1762 = vmatpush.bf16.msra.mxu2 %v1706_v14 }
  0x31   : > { %616 = vmatpush.bf16.msra.mxu1 %v1714_v15  ;;  %1770 = vmatpush.bf16.msra.mxu3 %v1714_v15 }
  0x33   : > { %568 = vmatmul.bf16.vlgmr.msra.gmra.mxu0 %v1690_v16  ;;  %588 = vmatmul.bf16.vlgmr.msra.gmra.mxu2 %v1694_v20 }
  0x34   : > { %617 = vmatmul.bf16.vlgmr.msra.gmra.mxu1 %v1698_v17  ;;  %637 = vmatmul.bf16.vlgmr.msra.gmra.mxu3 %v1702_v21 }
  0x35   : > { %764 = vmatpush.bf16.msrb.mxu2 %v1729_v22 }
  0x39   : > { %765 = vmatpush.bf16.msrb.mxu2 %v1728_v23 }
  0x3d   : > { %766 = vmatpush.bf16.msrb.mxu2 %v1727_v28 }
  0x41   : > { %767 = vmatpush.bf16.msrb.mxu2 %v1726_v29 }
  0x43   : > { %573 = vmatmul.bf16.gmra.mxu0 %v1691_v18  ;;  %593 = vmatmul.bf16.gmra.mxu2 %v1695_v26 }
  0x44   : > { %622 = vmatmul.bf16.gmra.mxu1 %v1699_v19  ;;  %642 = vmatmul.bf16.gmra.mxu3 %v1703_v27 }
  0x45   : > { %768 = vmatpush.bf16.msrb.mxu2 %v1725_v30 }
  0x49   : > { %769 = vmatpush.bf16.msrb.mxu2 %v1724_v31 }
  0x4d   : > { %770 = vmatpush.bf16.msrb.mxu2 %v1723_v38 }
  0x51   : > { %771 = vmatpush.bf16.msrb.mxu2 %v1722_v39 }
  0x53   : > { %578 = vmatmul.bf16.gmra.mxu0 %v1692_v24  ;;  %598 = vmatmul.bf16.gmra.mxu2 %v1696_v34 }
  0x54   : > { %627 = vmatmul.bf16.gmra.mxu1 %v1700_v25  ;;  %647 = vmatmul.bf16.gmra.mxu3 %v1704_v35 }
  0x63   : > { %583 = vmatmul.bf16.gmra.mxu0 %v1693_v32  ;;  %603 = vmatmul.bf16.gmra.mxu2 %v1697_v36 }
  0x64   : > { %632 = vmatmul.bf16.gmra.mxu1 %v1701_v33  ;;  %652 = vmatmul.bf16.gmra.mxu3 %v1705_v37  ;;  %v1737_v37 = vld [vmem:[%s2288_s4 + $0x78] sm:$0xff] }
  0x65   : > { %920 = vmatpush.bf16.msrb.mxu3 %v1737_v37 }
  0xb0   : > { %v569_v41 = vpop.f32.mrf.mxu0 }
  0xb1   : > { %v618_v42 = vpop.f32.mrf.mxu1  ;;  %v570_v43 = vadd.f32 %v2073_v40, %v569_v41  ;;  %v1736_v41 = vld [vmem:[%s2288_s4 + $0x70] sm:$0xff] }
  0xb2   : > { %921 = vmatpush.bf16.msrb.mxu3 %v1736_v41 }
  0xb3   : > { %v619_v44 = vadd.f32 %v618_v42, %v570_v43 }
  0xb5   : > { %v658_v48 = vmul.f32 0.2, %v619_v44 }
  0xb6   : > { %v589_v7 = vpop.f32.mrf.mxu2 }
  0xb7   : > { %v674_v51 = vmax.f32 %v619_v44, %v658_v48  ;;  %v638_v13 = vpop.f32.mrf.mxu3  ;;  %v590_v34 = vadd.f32 %v2073_v40, %v589_v7 }
  0xb8   : > { %v571_v45 = vpop.f32.mrf.mxu0 }
  0xb9   : > { %v620_v46 = vpop.f32.mrf.mxu1  ;;  %v572_v47 = vadd.f32 %v2073_v40, %v571_v45  ;;  %v639_v38 = vadd.f32 %v638_v13, %v590_v34 }
  0xbb   : > { %v621_v49 = vadd.f32 %v620_v46, %v572_v47  ;;  %v666_v43 = vmul.f32 0.2, %v639_v38 }
  0xbd   : > { %v659_v50 = vmul.f32 0.2, %v621_v49  ;;  %v682_v46 = vmax.f32 %v639_v38, %v666_v43 }
  0xbe   : > { %v591_v20 = vpop.f32.mrf.mxu2 }
  0xbf   : > { %v675_v52 = vmax.f32 %v621_v49, %v659_v50  ;;  %v640_v22 = vpop.f32.mrf.mxu3  ;;  %v592_v35 = vadd.f32 %v2073_v40, %v591_v20 }
  0xc0   : > { %v574_v53 = vpop.f32.mrf.mxu0 }
  0xc1   : > { %v623_v54 = vpop.f32.mrf.mxu1  ;;  %v690_v55 = vpack.c.bf16 %v675_v52, %v674_v51  ;;  %v575_v56 = vadd.f32 %v2073_v40, %v574_v53  ;;  %v641_v39 = vadd.f32 %v640_v22, %v592_v35  ;;  %v1735_v52 = vld [vmem:[%s2288_s4 + $0x68] sm:$0xff] }
  0xc2   : > { %922 = vmatpush.bf16.msrb.mxu3 %v1735_v52 }
  0xc3   : > { %772 = vmatmul.bf16.vlgmr.msrb.gmra.mxu2 %v690_v55  ;;  %v624_v57 = vadd.f32 %v623_v54, %v575_v56  ;;  %v667_v44 = vmul.f32 0.2, %v641_v39  ;;  %v1734_v56 = vld [vmem:[%s2288_s4 + $0x60] sm:$0xff] }
  0xc5   : > { %v660_v61 = vmul.f32 0.2, %v624_v57  ;;  %v683_v47 = vmax.f32 %v641_v39, %v667_v44 }
  0xc6   : > { %v594_v29 = vpop.f32.mrf.mxu2  ;;  %923 = vmatpush.bf16.msrb.mxu3 %v1734_v56 }
  0xc7   : > { %v676_v0 = vmax.f32 %v624_v57, %v660_v61  ;;  %v643_v33 = vpop.f32.mrf.mxu3  ;;  %v595_v49 = vadd.f32 %v2073_v40, %v594_v29  ;;  %v694_v51 = vpack.c.bf16 %v683_v47, %v682_v46 }
  0xc8   : > { %v576_v58 = vpop.f32.mrf.mxu0 }
  0xc9   : > { %v625_v59 = vpop.f32.mrf.mxu1  ;;  %v577_v60 = vadd.f32 %v2073_v40, %v576_v58  ;;  %v644_v54 = vadd.f32 %v643_v33, %v595_v49 }
  0xcb   : > { %v626_v62 = vadd.f32 %v625_v59, %v577_v60  ;;  %v668_v57 = vmul.f32 0.2, %v644_v54 }
  0xcd   : > { %v661_v63 = vmul.f32 0.2, %v626_v62  ;;  %v684_v60 = vmax.f32 %v644_v54, %v668_v57 }
  0xce   : > { %v596_v42 = vpop.f32.mrf.mxu2 }
  0xcf   : > { %v677_v1 = vmax.f32 %v626_v62, %v661_v63  ;;  %v645_v45 = vpop.f32.mrf.mxu3  ;;  %v597_v50 = vadd.f32 %v2073_v40, %v596_v42 }
  0xd0   : > { %v579_v2 = vpop.f32.mrf.mxu0 }
  0xd1   : > { %v628_v3 = vpop.f32.mrf.mxu1  ;;  %v691_v4 = vpack.c.bf16 %v677_v1, %v676_v0  ;;  %v580_v5 = vadd.f32 %v2073_v40, %v579_v2  ;;  %v646_v55 = vadd.f32 %v645_v45, %v597_v50  ;;  %v1733_v2 = vld [vmem:[%s2288_s4 + $0x58] sm:$0xff] }
  0xd2   : > { %924 = vmatpush.bf16.msrb.mxu3 %v1733_v2 }
  0xd3   : > { %777 = vmatmul.bf16.gmra.mxu2 %v691_v4  ;;  %v629_v6 = vadd.f32 %v628_v3, %v580_v5  ;;  %v669_v58 = vmul.f32 0.2, %v646_v55 }
  0xd5   : > { %v662_v11 = vmul.f32 0.2, %v629_v6  ;;  %v685_v61 = vmax.f32 %v646_v55, %v669_v58 }
  0xd6   : > { %v599_v48 = vpop.f32.mrf.mxu2 }
  0xd7   : > { %v678_v15 = vmax.f32 %v629_v6, %v662_v11  ;;  %v648_v53 = vpop.f32.mrf.mxu3  ;;  %v600_v63 = vadd.f32 %v2073_v40, %v599_v48  ;;  %v695_v1 = vpack.c.bf16 %v685_v61, %v684_v60  ;;  %v1732_v6 = vld [vmem:[%s2288_s4 + $0x50] sm:$0xff] }
  0xd8   : > { %v581_v8 = vpop.f32.mrf.mxu0  ;;  %925 = vmatpush.bf16.msrb.mxu3 %v1732_v6 }
  0xd9   : > { %v630_v9 = vpop.f32.mrf.mxu1  ;;  %v582_v10 = vadd.f32 %v2073_v40, %v581_v8  ;;  %v649_v4 = vadd.f32 %v648_v53, %v600_v63 }
  0xdb   : > { %v631_v12 = vadd.f32 %v630_v9, %v582_v10  ;;  %v670_v8 = vmul.f32 0.2, %v649_v4 }
  0xdd   : > { %v663_v14 = vmul.f32 0.2, %v631_v12  ;;  %v686_v10 = vmax.f32 %v649_v4, %v670_v8  ;;  %v1744_v8 = vld [vmem:[%s2288_s4 + $0xb0] sm:$0xff] }
  0xde   : > { %v601_v59 = vpop.f32.mrf.mxu2 }
  0xdf   : > { %v679_v16 = vmax.f32 %v631_v12, %v663_v14  ;;  %v650_v62 = vpop.f32.mrf.mxu3  ;;  %v602_v0 = vadd.f32 %v2073_v40, %v601_v59 }
  0xe0   : > { %v584_v17 = vpop.f32.mrf.mxu0 }
  0xe1   : > { %v633_v18 = vpop.f32.mrf.mxu1  ;;  %v692_v19 = vpack.c.bf16 %v679_v16, %v678_v15  ;;  %v585_v21 = vadd.f32 %v2073_v40, %v584_v17  ;;  %v651_v5 = vadd.f32 %v650_v62, %v602_v0 }
  0xe3   : > { %782 = vmatmul.bf16.gmra.mxu2 %v692_v19  ;;  %v634_v23 = vadd.f32 %v633_v18, %v585_v21  ;;  %v671_v9 = vmul.f32 0.2, %v651_v5  ;;  %v1731_v21 = vld [vmem:[%s2288_s4 + $0x48] sm:$0xff] }
  0xe4   : > { %926 = vmatpush.bf16.msrb.mxu3 %v1731_v21 }
  0xe5   : > { %v664_v27 = vmul.f32 0.2, %v634_v23  ;;  %v687_v11 = vmax.f32 %v651_v5, %v671_v9 }
  0xe6   : > { %v604_v3 = vpop.f32.mrf.mxu2 }
  0xe7   : > { %v680_v31 = vmax.f32 %v634_v23, %v664_v27  ;;  %v653_v7 = vpop.f32.mrf.mxu3  ;;  %v605_v13 = vadd.f32 %v2073_v40, %v604_v3  ;;  %v696_v15 = vpack.c.bf16 %v687_v11, %v686_v10 }
  0xe8   : > { %v586_v24 = vpop.f32.mrf.mxu0 }
  0xe9   : > { %v587_v25 = vadd.f32 %v2073_v40, %v586_v24  ;;  %v635_v26 = vpop.f32.mrf.mxu1  ;;  %v654_v17 = vadd.f32 %v653_v7, %v605_v13 }
  0xeb   : > { %v636_v28 = vadd.f32 %v635_v26, %v587_v25  ;;  %v672_v19 = vmul.f32 0.2, %v654_v17  ;;  %v1730_v25 = vld [vmem:[%s2288_s4 + $0x40] sm:$0xff] }
  0xec   : > { %927 = vmatpush.bf16.msrb.mxu3 %v1730_v25  ;;  %v2118_v26 = vld [vmem:[%s2287_s3 + $0x1] ss:$0 sm:$0xff] }
  0xed   : > { %v665_v30 = vmul.f32 0.2, %v636_v28  ;;  %v688_v22 = vmax.f32 %v654_v17, %v672_v19  ;;  %v1742_v19 = vld [vmem:[%s2288_s4 + $0xa0] sm:$0xff] }
  0xee   : > { %v606_v12 = vpop.f32.mrf.mxu2 }
  0xef   : > { %v681_v32 = vmax.f32 %v636_v28, %v665_v30  ;;  %v607_v14 = vadd.f32 %v2073_v40, %v606_v12  ;;  %v655_v16 = vpop.f32.mrf.mxu3  ;;  %v1743_v12 = vld [vmem:[%s2288_s4 + $0xa8] sm:$0xff] }
  0xf1   : > { %v693_v36 = vpack.c.bf16 %v681_v32, %v680_v31  ;;  %v656_v18 = vadd.f32 %v655_v16, %v607_v14 }
  0xf3   : > { %787 = vmatmul.bf16.gmra.mxu2 %v693_v36  ;;  %v673_v20 = vmul.f32 0.2, %v656_v18 }
  0xf5   : > { %v689_v23 = vmax.f32 %v656_v18, %v673_v20 }
  0xf7   : > { %v697_v24 = vpack.c.bf16 %v689_v23, %v688_v22  ;;  %v1741_v22 = vld [vmem:[%s2288_s4 + $0x98] sm:$0xff]  ;;  %v1740_v23 = vld [vmem:[%s2288_s4 + $0x90] sm:$0xff] }
 0x103   : > { %792 = vmatmul.bf16.gmra.mxu2 %v694_v51 }
 0x113   : > { %797 = vmatmul.bf16.gmra.mxu2 %v695_v1  ;;  %v1745_v1 = vld [vmem:[%s2288_s4 + $0xb8] sm:$0xff] }
 0x114   : > { %1076 = vmatpush.bf16.msrb.mxu0 %v1745_v1 }
 0x118   : > { %1077 = vmatpush.bf16.msrb.mxu0 %v1744_v8 }
 0x11c   : > { %1078 = vmatpush.bf16.msrb.mxu0 %v1743_v12 }
 0x120   : > { %1079 = vmatpush.bf16.msrb.mxu0 %v1742_v19  ;;  %v1752_v19 = vld [vmem:[%s2289_s5 + $0x30] sm:$0xff] }
 0x123   : > { %802 = vmatmul.bf16.gmra.mxu2 %v696_v15 }
 0x124   : > { %1080 = vmatpush.bf16.msrb.mxu0 %v1741_v22 }
 0x128   : > { %1081 = vmatpush.bf16.msrb.mxu0 %v1740_v23 }
 0x133   : > { %807 = vmatmul.bf16.gmra.mxu2 %v697_v24 }
 0x146   : > { %v773_v40 = vpop.f32.mrf.mxu2 }
 0x147   : > { %v774_v27 = vadd.f32 %v2118_v26, %v773_v40 }
 0x149   : > { %v813_v29 = vmul.f32 0.2, %v774_v27 }
 0x14b   : > { %v829_v32 = vmax.f32 %v774_v27, %v813_v29 }
 0x14e   : > { %v775_v28 = vpop.f32.mrf.mxu2 }
 0x14f   : > { %v776_v30 = vadd.f32 %v2118_v26, %v775_v28 }
 0x151   : > { %v814_v31 = vmul.f32 0.2, %v776_v30 }
 0x153   : > { %v830_v33 = vmax.f32 %v776_v30, %v814_v31 }
 0x155   : > { %v845_v34 = vpack.c.bf16 %v830_v33, %v829_v32 }
 0x156   : > { %v778_v35 = vpop.f32.mrf.mxu2 }
 0x157   : > { %928 = vmatmul.bf16.vlgmr.msrb.gmra.mxu3 %v845_v34  ;;  %v779_v36 = vadd.f32 %v2118_v26, %v778_v35 }
 0x159   : > { %v815_v38 = vmul.f32 0.2, %v779_v36 }
 0x15b   : > { %v831_v42 = vmax.f32 %v779_v36, %v815_v38 }
 0x15e   : > { %v780_v37 = vpop.f32.mrf.mxu2 }
 0x15f   : > { %v781_v39 = vadd.f32 %v2118_v26, %v780_v37  ;;  %v1739_v37 = vld [vmem:[%s2288_s4 + $0x88] sm:$0xff] }
 0x160   : > { %1082 = vmatpush.bf16.msrb.mxu0 %v1739_v37  ;;  %v1749_v37 = vld [vmem:[%s2289_s5 + $0x18] sm:$0xff] }
 0x161   : > { %v816_v41 = vmul.f32 0.2, %v781_v39 }
 0x163   : > { %v832_v43 = vmax.f32 %v781_v39, %v816_v41 }
 0x165   : > { %v846_v44 = vpack.c.bf16 %v832_v43, %v831_v42  ;;  %v1738_v43 = vld [vmem:[%s2288_s4 + $0x80] sm:$0xff] }
 0x166   : > { %v783_v45 = vpop.f32.mrf.mxu2  ;;  %1083 = vmatpush.bf16.msrb.mxu0 %v1738_v43 }
 0x167   : > { %933 = vmatmul.bf16.gmra.mxu3 %v846_v44  ;;  %v784_v46 = vadd.f32 %v2118_v26, %v783_v45 }
 0x169   : > { %v817_v48 = vmul.f32 0.2, %v784_v46 }
 0x16b   : > { %v833_v51 = vmax.f32 %v784_v46, %v817_v48 }
 0x16e   : > { %v785_v47 = vpop.f32.mrf.mxu2 }
 0x16f   : > { %v786_v49 = vadd.f32 %v2118_v26, %v785_v47 }
 0x171   : > { %v818_v50 = vmul.f32 0.2, %v786_v49 }
 0x173   : > { %v834_v52 = vmax.f32 %v786_v49, %v818_v50 }
 0x175   : > { %v847_v53 = vpack.c.bf16 %v834_v52, %v833_v51 }
 0x176   : > { %v788_v54 = vpop.f32.mrf.mxu2 }
 0x177   : > { %938 = vmatmul.bf16.gmra.mxu3 %v847_v53  ;;  %v789_v55 = vadd.f32 %v2118_v26, %v788_v54 }
 0x179   : > { %v819_v57 = vmul.f32 0.2, %v789_v55 }
 0x17b   : > { %v835_v60 = vmax.f32 %v789_v55, %v819_v57 }
 0x17e   : > { %v790_v56 = vpop.f32.mrf.mxu2 }
 0x17f   : > { %v791_v58 = vadd.f32 %v2118_v26, %v790_v56 }
 0x181   : > { %v820_v59 = vmul.f32 0.2, %v791_v58 }
 0x183   : > { %v836_v61 = vmax.f32 %v791_v58, %v820_v59 }
 0x185   : > { %v848_v62 = vpack.c.bf16 %v836_v61, %v835_v60 }
 0x186   : > { %v793_v63 = vpop.f32.mrf.mxu2 }
 0x187   : > { %943 = vmatmul.bf16.gmra.mxu3 %v848_v62  ;;  %v794_v0 = vadd.f32 %v2118_v26, %v793_v63 }
 0x189   : > { %v821_v3 = vmul.f32 0.2, %v794_v0 }
 0x18b   : > { %v837_v6 = vmax.f32 %v794_v0, %v821_v3 }
 0x18e   : > { %v795_v2 = vpop.f32.mrf.mxu2 }
 0x18f   : > { %v796_v4 = vadd.f32 %v2118_v26, %v795_v2 }
 0x191   : > { %v822_v5 = vmul.f32 0.2, %v796_v4 }
 0x193   : > { %v838_v7 = vmax.f32 %v796_v4, %v822_v5 }
 0x195   : > { %v849_v9 = vpack.c.bf16 %v838_v7, %v837_v6 }
 0x196   : > { %v798_v10 = vpop.f32.mrf.mxu2 }
 0x197   : > { %948 = vmatmul.bf16.gmra.mxu3 %v849_v9  ;;  %v799_v11 = vadd.f32 %v2118_v26, %v798_v10 }
 0x199   : > { %v823_v14 = vmul.f32 0.2, %v799_v11 }
 0x19b   : > { %v839_v17 = vmax.f32 %v799_v11, %v823_v14 }
 0x19e   : > { %v800_v13 = vpop.f32.mrf.mxu2 }
 0x19f   : > { %v801_v15 = vadd.f32 %v2118_v26, %v800_v13 }
 0x1a1   : > { %v824_v16 = vmul.f32 0.2, %v801_v15 }
 0x1a3   : > { %v840_v18 = vmax.f32 %v801_v15, %v824_v16  ;;  %v1753_v15 = vld [vmem:[%s2289_s5 + $0x38] sm:$0xff] }
 0x1a4   : > { %1233 = vmatpush.bf16.msrb.mxu1 %v1753_v15 }
 0x1a5   : > { %v850_v20 = vpack.c.bf16 %v840_v18, %v839_v17 }
 0x1a6   : > { %v803_v21 = vpop.f32.mrf.mxu2 }
 0x1a7   : > { %953 = vmatmul.bf16.gmra.mxu3 %v850_v20  ;;  %v804_v24 = vadd.f32 %v2118_v26, %v803_v21 }
 0x1a8   : > { %1234 = vmatpush.bf16.msrb.mxu1 %v1752_v19 }
 0x1a9   : > { %v825_v40 = vmul.f32 0.2, %v804_v24 }
 0x1ab   : > { %v841_v29 = vmax.f32 %v804_v24, %v825_v40  ;;  %v1751_v40 = vld [vmem:[%s2289_s5 + $0x28] sm:$0xff] }
 0x1ac   : > { %1235 = vmatpush.bf16.msrb.mxu1 %v1751_v40 }
 0x1ae   : > { %v805_v25 = vpop.f32.mrf.mxu2 }
 0x1af   : > { %v806_v27 = vadd.f32 %v2118_v26, %v805_v25 }
 0x1b1   : > { %v826_v28 = vmul.f32 0.2, %v806_v27 }
 0x1b3   : > { %v842_v30 = vmax.f32 %v806_v27, %v826_v28 }
 0x1b5   : > { %v851_v31 = vpack.c.bf16 %v842_v30, %v841_v29  ;;  %v1750_v30 = vld [vmem:[%s2289_s5 + $0x20] sm:$0xff] }
 0x1b6   : > { %v808_v32 = vpop.f32.mrf.mxu2  ;;  %1236 = vmatpush.bf16.msrb.mxu1 %v1750_v30 }
 0x1b7   : > { %958 = vmatmul.bf16.gmra.mxu3 %v851_v31  ;;  %v809_v33 = vadd.f32 %v2118_v26, %v808_v32 }
 0x1b9   : > { %v827_v35 = vmul.f32 0.2, %v809_v33 }
 0x1ba   : > { %1237 = vmatpush.bf16.msrb.mxu1 %v1749_v37 }
 0x1bb   : > { %v843_v39 = vmax.f32 %v809_v33, %v827_v35 }
 0x1be   : > { %v810_v34 = vpop.f32.mrf.mxu2 }
 0x1bf   : > { %v811_v36 = vadd.f32 %v2118_v26, %v810_v34  ;;  %v2163_v26 = vld [vmem:[%s2287_s3 + $0x2] ss:$0 sm:$0xff] }
 0x1c1   : > { %v828_v38 = vmul.f32 0.2, %v811_v36 }
 0x1c3   : > { %v844_v41 = vmax.f32 %v811_v36, %v828_v38 }
 0x1c5   : > { %v852_v42 = vpack.c.bf16 %v844_v41, %v843_v39  ;;  %v1748_v41 = vld [vmem:[%s2289_s5 + $0x10] sm:$0xff] }
 0x1c6   : > { %1238 = vmatpush.bf16.msrb.mxu1 %v1748_v41 }
 0x1c7   : > { %963 = vmatmul.bf16.gmra.mxu3 %v852_v42 }
 0x1da   : > { %v929_v44 = vpop.f32.mrf.mxu3 }
 0x1db   : > { %v930_v45 = vadd.f32 %v2163_v26, %v929_v44 }
 0x1dd   : > { %v969_v47 = vmul.f32 0.2, %v930_v45 }
 0x1df   : > { %v985_v50 = vmax.f32 %v930_v45, %v969_v47 }
 0x1e2   : > { %v931_v46 = vpop.f32.mrf.mxu3 }
 0x1e3   : > { %v932_v48 = vadd.f32 %v2163_v26, %v931_v46 }
 0x1e5   : > { %v970_v49 = vmul.f32 0.2, %v932_v48 }
 0x1e7   : > { %v986_v51 = vmax.f32 %v932_v48, %v970_v49 }
 0x1e9   : > { %v1001_v52 = vpack.c.bf16 %v986_v51, %v985_v50  ;;  %v1747_v51 = vld [vmem:[%s2289_s5 + $0x8] sm:$0xff] }
 0x1ea   : > { %v934_v53 = vpop.f32.mrf.mxu3  ;;  %1239 = vmatpush.bf16.msrb.mxu1 %v1747_v51 }
 0x1eb   : > { %1084 = vmatmul.bf16.vlgmr.msrb.gmra.mxu0 %v1001_v52  ;;  %v935_v54 = vadd.f32 %v2163_v26, %v934_v53 }
 0x1ed   : > { %v971_v56 = vmul.f32 0.2, %v935_v54 }
 0x1ef   : > { %v987_v59 = vmax.f32 %v935_v54, %v971_v56  ;;  %v1746_v56 = vld [vmem:[%s2289_s5] sm:$0xff] }
 0x1f0   : > { %1240 = vmatpush.bf16.msrb.mxu1 %v1746_v56 }
 0x1f2   : > { %v936_v55 = vpop.f32.mrf.mxu3 }
 0x1f3   : > { %v937_v57 = vadd.f32 %v2163_v26, %v936_v55 }
 0x1f5   : > { %v972_v58 = vmul.f32 0.2, %v937_v57 }
 0x1f7   : > { %v988_v60 = vmax.f32 %v937_v57, %v972_v58 }
 0x1f9   : > { %v1002_v61 = vpack.c.bf16 %v988_v60, %v987_v59 }
 0x1fa   : > { %v939_v62 = vpop.f32.mrf.mxu3 }
 0x1fb   : > { %1089 = vmatmul.bf16.gmra.mxu0 %v1002_v61  ;;  %v940_v63 = vadd.f32 %v2163_v26, %v939_v62  ;;  %v2208_v62 = vld [vmem:[%s2287_s3 + $0x3] ss:$0 sm:$0xff] }
 0x1fd   : > { %v973_v1 = vmul.f32 0.2, %v940_v63 }
 0x1ff   : > { %v989_v4 = vmax.f32 %v940_v63, %v973_v1 }
 0x202   : > { %v941_v0 = vpop.f32.mrf.mxu3 }
 0x203   : > { %v942_v2 = vadd.f32 %v2163_v26, %v941_v0 }
 0x205   : > { %v974_v3 = vmul.f32 0.2, %v942_v2 }
 0x207   : > { %v990_v5 = vmax.f32 %v942_v2, %v974_v3 }
 0x209   : > { %v1003_v6 = vpack.c.bf16 %v990_v5, %v989_v4 }
 0x20a   : > { %v944_v7 = vpop.f32.mrf.mxu3 }
 0x20b   : > { %1094 = vmatmul.bf16.gmra.mxu0 %v1003_v6  ;;  %v945_v8 = vadd.f32 %v2163_v26, %v944_v7 }
 0x20d   : > { %v975_v10 = vmul.f32 0.2, %v945_v8 }
 0x20f   : > { %v991_v13 = vmax.f32 %v945_v8, %v975_v10 }
 0x212   : > { %v946_v9 = vpop.f32.mrf.mxu3 }
 0x213   : > { %v947_v11 = vadd.f32 %v2163_v26, %v946_v9 }
 0x215   : > { %v976_v12 = vmul.f32 0.2, %v947_v11 }
 0x217   : > { %v992_v14 = vmax.f32 %v947_v11, %v976_v12 }
 0x219   : > { %v1004_v16 = vpack.c.bf16 %v992_v14, %v991_v13 }
 0x21a   : > { %v949_v17 = vpop.f32.mrf.mxu3 }
 0x21b   : > { %1099 = vmatmul.bf16.gmra.mxu0 %v1004_v16  ;;  %v950_v18 = vadd.f32 %v2163_v26, %v949_v17 }
 0x21d   : > { %v977_v21 = vmul.f32 0.2, %v950_v18 }
 0x21f   : > { %v993_v24 = vmax.f32 %v950_v18, %v977_v21 }
 0x222   : > { %v951_v20 = vpop.f32.mrf.mxu3 }
 0x223   : > { %v952_v22 = vadd.f32 %v2163_v26, %v951_v20 }
 0x225   : > { %v978_v23 = vmul.f32 0.2, %v952_v22 }
 0x227   : > { %v994_v25 = vmax.f32 %v952_v22, %v978_v23 }
 0x229   : > { %v1005_v27 = vpack.c.bf16 %v994_v25, %v993_v24 }
 0x22a   : > { %v954_v28 = vpop.f32.mrf.mxu3 }
 0x22b   : > { %1104 = vmatmul.bf16.gmra.mxu0 %v1005_v27  ;;  %v955_v29 = vadd.f32 %v2163_v26, %v954_v28 }
 0x22d   : > { %v979_v32 = vmul.f32 0.2, %v955_v29 }
 0x22f   : > { %v995_v35 = vmax.f32 %v955_v29, %v979_v32 }
 0x232   : > { %v956_v31 = vpop.f32.mrf.mxu3 }
 0x233   : > { %v957_v33 = vadd.f32 %v2163_v26, %v956_v31 }
 0x235   : > { %v980_v34 = vmul.f32 0.2, %v957_v33 }
 0x237   : > { %v996_v36 = vmax.f32 %v957_v33, %v980_v34 }
 0x239   : > { %v1006_v38 = vpack.c.bf16 %v996_v36, %v995_v35 }
 0x23a   : > { %v959_v39 = vpop.f32.mrf.mxu3 }
 0x23b   : > { %1109 = vmatmul.bf16.gmra.mxu0 %v1006_v38  ;;  %v960_v42 = vadd.f32 %v2163_v26, %v959_v39 }
 0x23d   : > { %v981_v44 = vmul.f32 0.2, %v960_v42 }
 0x23f   : > { %v997_v47 = vmax.f32 %v960_v42, %v981_v44 }
 0x242   : > { %v961_v43 = vpop.f32.mrf.mxu3 }
 0x243   : > { %v962_v45 = vadd.f32 %v2163_v26, %v961_v43 }
 0x245   : > { %v982_v46 = vmul.f32 0.2, %v962_v45 }
 0x247   : > { %v998_v48 = vmax.f32 %v962_v45, %v982_v46 }
 0x249   : > { %v1007_v49 = vpack.c.bf16 %v998_v48, %v997_v47 }
 0x24a   : > { %v964_v50 = vpop.f32.mrf.mxu3 }
 0x24b   : > { %1114 = vmatmul.bf16.gmra.mxu0 %v1007_v49  ;;  %v965_v52 = vadd.f32 %v2163_v26, %v964_v50 }
 0x24d   : > { %v983_v54 = vmul.f32 0.2, %v965_v52 }
 0x24f   : > { %v999_v58 = vmax.f32 %v965_v52, %v983_v54 }
 0x252   : > { %v966_v53 = vpop.f32.mrf.mxu3 }
 0x253   : > { %v967_v55 = vadd.f32 %v2163_v26, %v966_v53 }
 0x255   : > { %v984_v57 = vmul.f32 0.2, %v967_v55 }
 0x257   : > { %v1000_v59 = vmax.f32 %v967_v55, %v984_v57 }
 0x259   : > { %v1008_v60 = vpack.c.bf16 %v1000_v59, %v999_v58 }
 0x25b   : > { %1119 = vmatmul.bf16.gmra.mxu0 %v1008_v60 }
 0x268   : > { %v1085_v61 = vpop.f32.mrf.mxu0 }
 0x269   : > { %v1086_v63 = vadd.f32 %v2208_v62, %v1085_v61 }
 0x26b   : > { %v1125_v26 = vmul.f32 0.2, %v1086_v63 }
 0x26d   : > { %v1141_v3 = vmax.f32 %v1086_v63, %v1125_v26 }
 0x270   : > { %v1087_v0 = vpop.f32.mrf.mxu0 }
 0x271   : > { %v1088_v1 = vadd.f32 %v2208_v62, %v1087_v0 }
 0x273   : > { %v1126_v2 = vmul.f32 0.2, %v1088_v1 }
 0x275   : > { %v1142_v4 = vmax.f32 %v1088_v1, %v1126_v2 }
 0x277   : > { %v1157_v5 = vpack.c.bf16 %v1142_v4, %v1141_v3 }
 0x278   : > { %v1090_v6 = vpop.f32.mrf.mxu0 }
 0x279   : > { %1241 = vmatmul.bf16.vlgmr.msrb.gmra.mxu1 %v1157_v5  ;;  %v1091_v7 = vadd.f32 %v2208_v62, %v1090_v6  ;;  %v1816_v6 = vld [vmem:[%s2290_s6] ss:$0 sm:$0xff] }
 0x27b   : > { %v1127_v9 = vmul.f32 0.2, %v1091_v7 }
 0x27d   : > { %v1143_v12 = vmax.f32 %v1091_v7, %v1127_v9 }
 0x280   : > { %v1092_v8 = vpop.f32.mrf.mxu0 }
 0x281   : > { %v1093_v10 = vadd.f32 %v2208_v62, %v1092_v8 }
 0x283   : > { %v1128_v11 = vmul.f32 0.2, %v1093_v10 }
 0x285   : > { %v1144_v13 = vmax.f32 %v1093_v10, %v1128_v11 }
 0x287   : > { %v1158_v14 = vpack.c.bf16 %v1144_v13, %v1143_v12 }
 0x288   : > { %v1095_v15 = vpop.f32.mrf.mxu0 }
 0x289   : > { %1246 = vmatmul.bf16.gmra.mxu1 %v1158_v14  ;;  %v1096_v16 = vadd.f32 %v2208_v62, %v1095_v15 }
 0x28b   : > { %v1129_v18 = vmul.f32 0.2, %v1096_v16 }
 0x28d   : > { %v1145_v21 = vmax.f32 %v1096_v16, %v1129_v18 }
 0x290   : > { %v1097_v17 = vpop.f32.mrf.mxu0 }
 0x291   : > { %v1098_v19 = vadd.f32 %v2208_v62, %v1097_v17 }
 0x293   : > { %v1130_v20 = vmul.f32 0.2, %v1098_v19 }
 0x295   : > { %v1146_v22 = vmax.f32 %v1098_v19, %v1130_v20 }
 0x297   : > { %v1159_v23 = vpack.c.bf16 %v1146_v22, %v1145_v21 }
 0x298   : > { %v1100_v24 = vpop.f32.mrf.mxu0 }
 0x299   : > { %1251 = vmatmul.bf16.gmra.mxu1 %v1159_v23  ;;  %v1101_v25 = vadd.f32 %v2208_v62, %v1100_v24 }
 0x29b   : > { %v1131_v27 = vmul.f32 0.2, %v1101_v25 }
 0x29d   : > { %v1147_v30 = vmax.f32 %v1101_v25, %v1131_v27 }
 0x2a0   : > { %v1102_v40 = vpop.f32.mrf.mxu0 }
 0x2a1   : > { %v1103_v28 = vadd.f32 %v2208_v62, %v1102_v40 }
 0x2a3   : > { %v1132_v29 = vmul.f32 0.2, %v1103_v28 }
 0x2a5   : > { %v1148_v31 = vmax.f32 %v1103_v28, %v1132_v29 }
 0x2a7   : > { %v1160_v32 = vpack.c.bf16 %v1148_v31, %v1147_v30 }
 0x2a8   : > { %v1105_v33 = vpop.f32.mrf.mxu0 }
 0x2a9   : > { %1256 = vmatmul.bf16.gmra.mxu1 %v1160_v32  ;;  %v1106_v34 = vadd.f32 %v2208_v62, %v1105_v33 }
 0x2ab   : > { %v1133_v36 = vmul.f32 0.2, %v1106_v34 }
 0x2ad   : > { %v1149_v39 = vmax.f32 %v1106_v34, %v1133_v36 }
 0x2b0   : > { %v1107_v35 = vpop.f32.mrf.mxu0 }
 0x2b1   : > { %v1108_v37 = vadd.f32 %v2208_v62, %v1107_v35 }
 0x2b3   : > { %v1134_v38 = vmul.f32 0.2, %v1108_v37 }
 0x2b5   : > { %v1150_v41 = vmax.f32 %v1108_v37, %v1134_v38 }
 0x2b7   : > { %v1161_v42 = vpack.c.bf16 %v1150_v41, %v1149_v39 }
 0x2b8   : > { %v1110_v43 = vpop.f32.mrf.mxu0 }
 0x2b9   : > { %1261 = vmatmul.bf16.gmra.mxu1 %v1161_v42  ;;  %v1111_v44 = vadd.f32 %v2208_v62, %v1110_v43 }
 0x2bb   : > { %v1135_v46 = vmul.f32 0.2, %v1111_v44 }
 0x2bd   : > { %v1151_v49 = vmax.f32 %v1111_v44, %v1135_v46 }
 0x2c0   : > { %v1112_v45 = vpop.f32.mrf.mxu0 }
 0x2c1   : > { %v1113_v47 = vadd.f32 %v2208_v62, %v1112_v45 }
 0x2c3   : > { %v1136_v48 = vmul.f32 0.2, %v1113_v47 }
 0x2c5   : > { %v1152_v50 = vmax.f32 %v1113_v47, %v1136_v48 }
 0x2c7   : > { %v1162_v51 = vpack.c.bf16 %v1152_v50, %v1151_v49 }
 0x2c8   : > { %v1115_v52 = vpop.f32.mrf.mxu0 }
 0x2c9   : > { %1266 = vmatmul.bf16.gmra.mxu1 %v1162_v51  ;;  %v1116_v53 = vadd.f32 %v2208_v62, %v1115_v52 }
 0x2cb   : > { %v1137_v55 = vmul.f32 0.2, %v1116_v53 }
 0x2cd   : > { %v1153_v58 = vmax.f32 %v1116_v53, %v1137_v55 }
 0x2d0   : > { %v1117_v54 = vpop.f32.mrf.mxu0 }
 0x2d1   : > { %v1118_v56 = vadd.f32 %v2208_v62, %v1117_v54 }
 0x2d3   : > { %v1138_v57 = vmul.f32 0.2, %v1118_v56 }
 0x2d5   : > { %v1154_v59 = vmax.f32 %v1118_v56, %v1138_v57 }
 0x2d7   : > { %v1163_v60 = vpack.c.bf16 %v1154_v59, %v1153_v58 }
 0x2d8   : > { %v1120_v61 = vpop.f32.mrf.mxu0 }
 0x2d9   : > { %1271 = vmatmul.bf16.gmra.mxu1 %v1163_v60  ;;  %v1121_v63 = vadd.f32 %v2208_v62, %v1120_v61 }
 0x2db   : > { %v1139_v26 = vmul.f32 0.2, %v1121_v63 }
 0x2dd   : > { %v1155_v3 = vmax.f32 %v1121_v63, %v1139_v26 }
 0x2e0   : > { %v1122_v0 = vpop.f32.mrf.mxu0 }
 0x2e1   : > { %v1123_v1 = vadd.f32 %v2208_v62, %v1122_v0 }
 0x2e3   : > { %v1140_v2 = vmul.f32 0.2, %v1123_v1 }
 0x2e5   : > { %v1156_v4 = vmax.f32 %v1123_v1, %v1140_v2 }
 0x2e7   : > { %v1164_v5 = vpack.c.bf16 %v1156_v4, %v1155_v3 }
 0x2e9   : > { %1276 = vmatmul.bf16.gmra.mxu1 %v1164_v5 }
 0x2f6   : > { %v1242_v7 = vpop.f32.mrf.mxu1 }
 0x2f7   : > { %v1243_v8 = vadd.f32 %v1816_v6, %v1242_v7 }
 0x2f9   : > { %1282 = vst [vmem:[%s2232_s18] sm:$0xff] %v1243_v8 }
 0x2fe   : > { %v1244_v62 = vpop.f32.mrf.mxu1 }
 0x2ff   : > { %v1245_v9 = vadd.f32 %v1816_v6, %v1244_v62 }
 0x301   : > { %1283 = vst [vmem:[%s2232_s18 + $0x8] sm:$0xff] %v1245_v9 }
 0x306   : > { %v1247_v10 = vpop.f32.mrf.mxu1 }
 0x307   : > { %v1248_v11 = vadd.f32 %v1816_v6, %v1247_v10 }
 0x309   : > { %1284 = vst [vmem:[%s2232_s18 + $0x10] sm:$0xff] %v1248_v11 }
 0x30e   : > { %v1249_v12 = vpop.f32.mrf.mxu1 }
 0x30f   : > { %v1250_v13 = vadd.f32 %v1816_v6, %v1249_v12 }
 0x311   : > { %1285 = vst [vmem:[%s2232_s18 + $0x18] sm:$0xff] %v1250_v13 }
 0x316   : > { %v1252_v14 = vpop.f32.mrf.mxu1 }
 0x317   : > { %v1253_v15 = vadd.f32 %v1816_v6, %v1252_v14 }
 0x319   : > { %1286 = vst [vmem:[%s2232_s18 + $0x20] sm:$0xff] %v1253_v15 }
 0x31e   : > { %v1254_v16 = vpop.f32.mrf.mxu1 }
 0x31f   : > { %v1255_v17 = vadd.f32 %v1816_v6, %v1254_v16 }
 0x321   : > { %1287 = vst [vmem:[%s2232_s18 + $0x28] sm:$0xff] %v1255_v17 }
 0x326   : > { %v1257_v18 = vpop.f32.mrf.mxu1 }
 0x327   : > { %v1258_v19 = vadd.f32 %v1816_v6, %v1257_v18 }
 0x329   : > { %1288 = vst [vmem:[%s2232_s18 + $0x30] sm:$0xff] %v1258_v19 }
 0x32e   : > { %v1259_v20 = vpop.f32.mrf.mxu1 }
 0x32f   : > { %v1260_v21 = vadd.f32 %v1816_v6, %v1259_v20 }
 0x331   : > { %1289 = vst [vmem:[%s2232_s18 + $0x38] sm:$0xff] %v1260_v21 }
 0x336   : > { %v1262_v22 = vpop.f32.mrf.mxu1 }
 0x337   : > { %v1263_v23 = vadd.f32 %v1816_v6, %v1262_v22 }
 0x339   : > { %1290 = vst [vmem:[%s2232_s18 + $0x40] sm:$0xff] %v1263_v23 }
 0x33e   : > { %v1264_v24 = vpop.f32.mrf.mxu1 }
 0x33f   : > { %v1265_v25 = vadd.f32 %v1816_v6, %v1264_v24 }
 0x341   : > { %1291 = vst [vmem:[%s2232_s18 + $0x48] sm:$0xff] %v1265_v25 }
 0x346   : > { %v1267_v40 = vpop.f32.mrf.mxu1 }
 0x347   : > { %v1268_v27 = vadd.f32 %v1816_v6, %v1267_v40 }
 0x349   : > { %1292 = vst [vmem:[%s2232_s18 + $0x50] sm:$0xff] %v1268_v27 }
 0x34e   : > { %v1269_v28 = vpop.f32.mrf.mxu1 }
 0x34f   : > { %v1270_v29 = vadd.f32 %v1816_v6, %v1269_v28 }
 0x351   : > { %1293 = vst [vmem:[%s2232_s18 + $0x58] sm:$0xff] %v1270_v29 }
 0x356   : > { %v1272_v30 = vpop.f32.mrf.mxu1 }
 0x357   : > { %v1273_v31 = vadd.f32 %v1816_v6, %v1272_v30 }
 0x359   : > { %1294 = vst [vmem:[%s2232_s18 + $0x60] sm:$0xff] %v1273_v31 }
 0x35e   : > { %v1274_v32 = vpop.f32.mrf.mxu1 }
 0x35f   : > { %v1275_v33 = vadd.f32 %v1816_v6, %v1274_v32 }
 0x361   : > { %1295 = vst [vmem:[%s2232_s18 + $0x68] sm:$0xff] %v1275_v33 }
 0x366   : > { %v1277_v34 = vpop.f32.mrf.mxu1 }
 0x367   : > { %v1278_v35 = vadd.f32 %v1816_v6, %v1277_v34 }
 0x369   : > { %1296 = vst [vmem:[%s2232_s18 + $0x70] sm:$0xff] %v1278_v35 }
 0x36e   : > { %v1279_v36 = vpop.f32.mrf.mxu1 }
 0x36f   : > { %v1280_v37 = vadd.f32 %v1816_v6, %v1279_v36 }
 0x371   : > { %1297 = vst [vmem:[%s2232_s18 + $0x78] sm:$0xff] %v1280_v37 }
 0x372   : > { %1844 = shalt.err (!%p1841_p3)
}
 0x373   : > { %s1881_s16 = smov 128   ;;  %s1882_s18 = smov 8  }
 0x374   : > { %1771 = dma.vmem_to_hbm [thread:$0]  (%p1961_p5), %s1312_s29, 2048, %s1314_s8, %s1299_s9, %s1881_s16, %s1881_s16, %s1882_s18  }
 0x375 PF: > { %p1777_p4 = scmp.ge.s32.totalorder %s1879_s27, 2  ;;  %s1328_s20 = sand.u32 1, %s1867_s24  }
 0x376   : > { %s1329_s21 = scalar_lea.sflag [#allocation3], %s1328_s20 }
 0x377   : > { %p1774_p7 = pnand %p1777_p4, %p1965_p6 }
 0x379   : > { %p1775_p8 = pneg %p1774_p7 }
 0x37b   : > { %1862 = dma.done.wait (%p1775_p8), %s1329_s21, 2048  }
 0x37c   : > { %1864 = vsyncadd (%p1775_p8), %s1329_s21, 4294965248  ;;  %p17_p9 = scmp.ge.s32.totalorder %s1948_s30, 4   ;;  %s2294_s24 = smov %s1871_s25 }
 0x37d   : > { %s2295_s25 = smov %s1875_s26  ;;  %s2296_s26 = smov %s1959_s10 }
 0x37e   : > { %s2297_s27 = smov %s1948_s30  ;;  %19 = sbr.rel (!%p17_p9) target bundleno = 3 (0x3), region = 88 }
 0x383   :  { %1335 = vsyncpa [#allocation3], 1 }
 0x384   :  { %1337 = vsyncpa [#allocation3 + $0x1], 1 }

</bundles_post_ra>
